<compile_context>
chip_gen: v5e
topology: v5e:2x2
jax: 0.10.0
libtpu: 0.0.40
codegen_flags: <defaults>
</compile_context>

<pallas_src>
import jax
import jax.numpy as jnp
from jax.experimental import pallas as pl
from jax.experimental.pallas import tpu as pltpu


def _gen_states_kernel(idx_ref, table_ref, out_ref):
    """One grid step processes TM rows.

    idx_ref   : (TM, 1)   int32   indices for this block
    table_ref : (V, D)    float32 full embedding table (VMEM-resident)
    out_ref   : (TM, 2*D) float32 interleaved [p, 1-p] along the lane axis
    """
    idx = idx_ref[...]                       # (TM, 1)
    table = table_ref[...]                   # (V, D)
    tm = idx.shape[0]
    v, d = table.shape

    # In-kernel row gather as a one-hot matmul (MXU).
    one_hot = (idx == jax.lax.broadcasted_iota(jnp.int32, (tm, v), 1)
               ).astype(jnp.float32)                                    # (TM, V)
    rows = jnp.dot(one_hot, table, preferred_element_type=jnp.float32)  # (TM, D)

    p = jax.nn.sigmoid(rows)                                            # (TM, D)

    # Interleave p / (1 - p) along the lane axis without any reshape:
    #   out[:, 2j]   = p[:, j]
    #   out[:, 2j+1] = 1 - p[:, j]
    # done as p @ M + parity, with M[j, 2j] = 1, M[j, 2j+1] = -1 (exact:
    # each output lane has exactly one nonzero product).
    col = jax.lax.broadcasted_iota(jnp.int32, (d, 2 * d), 1)
    row = jax.lax.broadcasted_iota(jnp.int32, (d, 2 * d), 0)
    m = (jnp.where(col == 2 * row, 1.0, 0.0)
         - jnp.where(col == 2 * row + 1, 1.0, 0.0)).astype(jnp.float32)
    parity = (jax.lax.broadcasted_iota(jnp.int32, (tm, 2 * d), 1) % 2
              ).astype(jnp.float32)
    out_ref[...] = jnp.dot(p, m, preferred_element_type=jnp.float32) + parity


def _round_up(x, m):
    return (x + m - 1) // m * m


def generator_states_discrete(idx, emb_weight, *, block_rows=512,
                              force_pallas=False):
    """Pallas port of Generator_states_discrete.forward.

    idx        : int array, any shape (indices into the embedding table)
    emb_weight : (dat_num, del_num) float embedding weights
    returns    : float32 array of shape idx.shape + (del_num, 2)
    """
    idx = jnp.asarray(idx)
    emb_weight = jnp.asarray(emb_weight, dtype=jnp.float32)
    orig_shape = idx.shape
    idx_flat = idx.reshape(-1).astype(jnp.int32)
    n = idx_flat.shape[0]
    v, d = emb_weight.shape
    table_bytes = v * d * 4

    # Small problems: pallas_call launch overhead dwarfs the work.
    # Huge tables: cannot be VMEM-resident; let XLA's fused gather handle it.
    # TODO(synk): add a scalar-prefetch / DMA-gather Pallas path for tables
    # that do not fit in VMEM instead of falling back to plain JAX.
    if (not force_pallas) and (n * d < 4096 or table_bytes > 48 * 1024 * 1024):
        p = jax.nn.sigmoid(emb_weight[idx_flat])[..., None]
        out = jnp.concatenate([p, 1.0 - p], axis=-1)
        return out.reshape(orig_shape + (d, 2))

    # Block of rows per grid step (multiple of 8 for sublane tiling).
    tm = _round_up(min(block_rows, _round_up(n, 8)), 8)
    n_pad = _round_up(n, tm)
    if n_pad != n:
        idx_flat = jnp.pad(idx_flat, (0, n_pad - n))  # pad with valid index 0
    idx2d = idx_flat.reshape(n_pad, 1)
    num_blocks = n_pad // tm

    # VMEM budget: double-buffered idx / out blocks + the resident table.
    est_vmem = 2 * (tm * 128 * 4 + tm * max(2 * d, 128) * 4) + 2 * table_bytes
    compiler_kwargs = dict(dimension_semantics=("parallel",))
    if est_vmem > 16 * 1024 * 1024:
        compiler_kwargs["vmem_limit_bytes"] = min(
            int(est_vmem * 1.5), 100 * 1024 * 1024)

    out = pl.pallas_call(
        _gen_states_kernel,
        out_shape=jax.ShapeDtypeStruct((n_pad, 2 * d), jnp.float32),
        grid=(num_blocks,),
        in_specs=[
            pl.BlockSpec((tm, 1), lambda i: (i, 0)),    # idx rows for this block
            pl.BlockSpec((v, d), lambda i: (0, 0)),     # whole table, VMEM-resident
        ],
        out_specs=pl.BlockSpec((tm, 2 * d), lambda i: (i, 0)),
        compiler_params=pltpu.CompilerParams(**compiler_kwargs),
    )(idx2d, emb_weight)

    # Interleaved slab -> (N, del_num, 2); contiguous reshape, no transpose.
    return out[:n].reshape(orig_shape + (d, 2))


if __name__ == "__main__":
    key = jax.random.PRNGKey(0)
    k_w, k_i, k_i2 = jax.random.split(key, 3)

    dat_num = 32   # embedding vocabulary size
    del_num = 16   # embedding dimension
    n_idx = 8      # number of indices looked up

    # nn.Embedding default init: weight ~ N(0, 1)
    emb_weight = jax.random.normal(k_w, (dat_num, del_num), dtype=jnp.float32)
    idx = jax.random.randint(k_i, (n_idx,), 0, dat_num, dtype=jnp.int32)

    # Run the Pallas kernel (force it on even at this tiny size).
    probs = generator_states_discrete(idx, emb_weight, force_pallas=True)
    probs = jax.block_until_ready(probs)

    # Pure-JAX reference.
    p_ref = jax.nn.sigmoid(emb_weight[idx])[..., None]           # (N, D, 1)
    ref = jnp.concatenate([p_ref, 1.0 - p_ref], axis=-1)         # (N, D, 2)
    assert probs.shape == (n_idx, del_num, 2), probs.shape
    assert jnp.allclose(probs, ref, atol=1e-6), float(jnp.max(jnp.abs(probs - ref)))

    # Second case: multiple grid blocks + row padding path.
    n2 = 300
    idx2 = jax.random.randint(k_i2, (n2,), 0, dat_num, dtype=jnp.int32)
    probs2 = generator_states_discrete(idx2, emb_weight, block_rows=128,
                                       force_pallas=True)
    probs2 = jax.block_until_ready(probs2)
    p2 = jax.nn.sigmoid(emb_weight[idx2])[..., None]
    ref2 = jnp.concatenate([p2, 1.0 - p2], axis=-1)
    assert probs2.shape == (n2, del_num, 2), probs2.shape
    assert jnp.allclose(probs2, ref2, atol=1e-6), float(jnp.max(jnp.abs(probs2 - ref2)))

    print("KERNEL_OK")
</pallas_src>

<mosaic_0001>
module attributes {stable_mosaic.version = 11 : i64} {
  func.func @_gen_states_kernel(%arg0: i32, %arg1: memref<8x1xi32, #tpu.memory_space<vmem>>, %arg2: memref<32x16xf32, #tpu.memory_space<vmem>>, %arg3: memref<8x32xf32, #tpu.memory_space<vmem>>) attributes {dimension_semantics = [#tpu.dimension_semantics<parallel>], iteration_bounds = array<i64: 1>, scalar_prefetch = 0 : i64, scratch_operands = 0 : i64, tpu.core_type = #tpu.core_type<tc>, window_params = [{transform_indices = @transform_0, window_bounds = array<i64: 8, 1>}, {pipeline_mode = #tpu.pipeline_mode<synchronous>, transform_indices = @transform_1, window_bounds = array<i64: 32, 16>}, {transform_indices = @transform_2, window_bounds = array<i64: 8, 32>}]} {
    %c0 = arith.constant 0 : index
    %c0_0 = arith.constant 0 : index
    %0 = vector.load %arg1[%c0, %c0_0] : memref<8x1xi32, #tpu.memory_space<vmem>>, vector<8x1xi32>
    %c0_1 = arith.constant 0 : index
    %c0_2 = arith.constant 0 : index
    %1 = vector.load %arg2[%c0_1, %c0_2] : memref<32x16xf32, #tpu.memory_space<vmem>>, vector<32x16xf32>
    %2 = tpu.iota {dimensions = array<i32: 1>} : vector<8x32xi32>
    %3 = vector.broadcast %0 : vector<8x1xi32> to vector<8x32xi32>
    %4 = arith.cmpi eq, %3, %2 : vector<8x32xi32>
    %5 = arith.extui %4 : vector<8x32xi1> to vector<8x32xi32>
    %6 = arith.sitofp %5 : vector<8x32xi32> to vector<8x32xf32>
    %cst = arith.constant dense<0.000000e+00> : vector<8x16xf32>
    %7 = tpu.matmul %6, %1, %cst {dimension_numbers = #tpu.dot_dimension_numbers<[1], [0], [0], [1], [0, 0, 1, 1], [], []>} : vector<8x32xf32>, vector<32x16xf32>, vector<8x16xf32> -> vector<8x16xf32>
    %8 = arith.negf %7 : vector<8x16xf32>
    %9 = math.exp %8 : vector<8x16xf32>
    %cst_3 = arith.constant 1.000000e+00 : f32
    %10 = vector.broadcast %cst_3 : f32 to vector<8x16xf32>
    %11 = arith.addf %10, %9 : vector<8x16xf32>
    %12 = arith.divf %10, %11 : vector<8x16xf32>
    %13 = tpu.iota {dimensions = array<i32: 1>} : vector<16x32xi32>
    %14 = tpu.iota {dimensions = array<i32: 0>} : vector<16x32xi32>
    %c2_i32 = arith.constant 2 : i32
    %15 = vector.broadcast %c2_i32 : i32 to vector<16x32xi32>
    %16 = arith.muli %15, %14 : vector<16x32xi32>
    %17 = arith.cmpi eq, %13, %16 : vector<16x32xi32>
    %cst_4 = arith.constant 1.000000e+00 : f32
    %cst_5 = arith.constant 0.000000e+00 : f32
    %18 = vector.broadcast %cst_4 : f32 to vector<16x32xf32>
    %19 = vector.broadcast %cst_5 : f32 to vector<16x32xf32>
    %20 = arith.select %17, %18, %19 : vector<16x32xi1>, vector<16x32xf32>
    %c2_i32_6 = arith.constant 2 : i32
    %21 = vector.broadcast %c2_i32_6 : i32 to vector<16x32xi32>
    %22 = arith.muli %21, %14 : vector<16x32xi32>
    %c1_i32 = arith.constant 1 : i32
    %23 = vector.broadcast %c1_i32 : i32 to vector<16x32xi32>
    %24 = arith.addi %22, %23 : vector<16x32xi32>
    %25 = arith.cmpi eq, %13, %24 : vector<16x32xi32>
    %cst_7 = arith.constant 1.000000e+00 : f32
    %cst_8 = arith.constant 0.000000e+00 : f32
    %26 = vector.broadcast %cst_7 : f32 to vector<16x32xf32>
    %27 = vector.broadcast %cst_8 : f32 to vector<16x32xf32>
    %28 = arith.select %25, %26, %27 : vector<16x32xi1>, vector<16x32xf32>
    %29 = arith.subf %20, %28 : vector<16x32xf32>
    %30 = tpu.iota {dimensions = array<i32: 1>} : vector<8x32xi32>
    %c2_i32_9 = arith.constant 2 : i32
    %c0_i32 = arith.constant 0 : i32
    %31 = arith.cmpi eq, %c2_i32_9, %c0_i32 : i32
    %c1_i32_10 = arith.constant 1 : i32
    %32 = arith.select %31, %c1_i32_10, %c2_i32_9 : i32
    %33 = vector.broadcast %32 : i32 to vector<8x32xi32>
    %34 = arith.remsi %30, %33 : vector<8x32xi32>
    %c0_i32_11 = arith.constant 0 : i32
    %35 = vector.broadcast %c0_i32_11 : i32 to vector<8x32xi32>
    %36 = arith.cmpi ne, %34, %35 : vector<8x32xi32>
    %c0_i32_12 = arith.constant 0 : i32
    %37 = vector.broadcast %c0_i32_12 : i32 to vector<8x32xi32>
    %38 = arith.cmpi slt, %34, %37 : vector<8x32xi32>
    %c0_i32_13 = arith.constant 0 : i32
    %39 = arith.cmpi slt, %32, %c0_i32_13 : i32
    %40 = vector.broadcast %39 : i1 to vector<8x32xi1>
    %41 = vector.broadcast %40 : vector<8x32xi1> to vector<8x32xi1>
    %42 = arith.xori %38, %41 : vector<8x32xi1>
    %43 = arith.andi %42, %36 : vector<8x32xi1>
    %44 = vector.broadcast %32 : i32 to vector<8x32xi32>
    %45 = arith.addi %34, %44 : vector<8x32xi32>
    %46 = arith.select %43, %45, %34 : vector<8x32xi1>, vector<8x32xi32>
    %47 = arith.sitofp %46 : vector<8x32xi32> to vector<8x32xf32>
    %cst_14 = arith.constant dense<0.000000e+00> : vector<8x32xf32>
    %48 = tpu.matmul %12, %29, %cst_14 {dimension_numbers = #tpu.dot_dimension_numbers<[1], [0], [0], [1], [0, 0, 1, 1], [], []>} : vector<8x16xf32>, vector<16x32xf32>, vector<8x32xf32> -> vector<8x32xf32>
    %49 = arith.addf %48, %47 : vector<8x32xf32>
    %c0_15 = arith.constant 0 : index
    %c0_16 = arith.constant 0 : index
    %50 = vector.load %arg3[%c0_15, %c0_16] : memref<8x32xf32, #tpu.memory_space<vmem>>, vector<8x32xf32>
    tpu.vector_store %arg3[%c0_15, %c0_16], %49 {strides = array<i32>} : memref<8x32xf32, #tpu.memory_space<vmem>>, vector<8x32xf32>,
    return
  }
  func.func @transform_0(%arg0: i32) -> (i32, i32) {
    %c0_i32 = arith.constant 0 : i32
    %c0_i32_0 = arith.constant 0 : i32
    return %arg0, %c0_i32 : i32, i32
  }
  func.func @transform_1(%arg0: i32) -> (i32, i32) {
    %c0_i32 = arith.constant 0 : i32
    %c0_i32_0 = arith.constant 0 : i32
    %c0_i32_1 = arith.constant 0 : i32
    return %c0_i32, %c0_i32_0 : i32, i32
  }
  func.func @transform_2(%arg0: i32) -> (i32, i32) {
    %c0_i32 = arith.constant 0 : i32
    %c0_i32_0 = arith.constant 0 : i32
    return %arg0, %c0_i32 : i32, i32
  }
}

</mosaic_0001>

<bundles_post_ra>
// kernel: tpu_custom_call.1
= control target key start
LH: loop header
LB: loop body
LE: loop exit
PB: predicated region body
PF: predicated region fallthrough
CT: control target
= control target key end

     0   :  { %v177_v3 = vmov 0   ;;  %s215_s0 = inlined_call_operand.vmem [shape: s32[8,1], index: 0, kind: input, shape index: {}]   ;;  %s216_s1 = inlined_call_operand.vmem [shape: f32[32,16], index: 1, kind: input, shape index: {}]   ;;  %s217_s2 = inlined_call_operand.hbm [shape: f32[8,32], index: 2, kind: output, shape index: {}]  }
   0x1   :  { %v12_v0 = vld [vmem:[%s215_s0] sm:$0xff]  ;;  %v16_v1 = vld [vmem:[%s216_s1 + $0x18] sm:$0xff]  ;;  %v15_v2 = vld [vmem:[%s216_s1 + $0x10] sm:$0xff]  ;;  %146 = vset.pattern.permute.xlu0 %v177_v3 }
   0x2   :  { %41 = vmatpush.msra.mxu0 %v16_v1 }
   0x3   :  { %7 = vsyncpa [#allocation3], 0  ;;  %20 = vperm.xlu0 %146, %v12_v0   ;;  %v14_v4 = vld [vmem:[%s216_s1 + $0x8] sm:$0xff]  ;;  %v13_v5 = vld [vmem:[%s216_s1] sm:$0xff]  ;;  %v17_v6 = vlaneseq  ;;  %vm25_vm0 = vcmask 261120   ;;  %v178_v9 = vmov 0.0  }
   0x4   :  { %42 = vmatpush.msra.mxu0 %v15_v2  ;;  %vm98_vm9 = vcmask 130048   ;;  %s179_s1 = smov [#allocation2]   ;;  %s130_s21 = sshll.u32 %s217_s2, 4  ;;  %s131_s21 = int_to_ptr.hbm [resolvable:$true] %s130_s21 }
   0x5   :  { %v18_v7 = vand.u32 127, %v17_v6  ;;  %v69_v11 = vshrl.u32 %v17_v6, 7  ;;  %s128_s18 = sshll.u32 %s179_s1, 4  ;;  %s129_s18 = int_to_ptr.vmem [resolvable:$true] %s128_s18 }
   0x6   :  { %43 = vmatpush.msra.mxu0 %v14_v4 }
   0x7   :  { %v70_v12 = vadd.s32 8, %v69_v11  ;;  %v71_v13 = vmul.u32 2, %v69_v11  ;;  %v89_v37 = vand.u32 1, %v18_v7 }
   0x8   :  { %44 = vmatpush.msra.mxu0 %v13_v5 }
   0x9   :  { %v72_v14 = vmul.u32 2, %v70_v12  ;;  %vm73_vm2 = vcmp.eq.s32.totalorder %v18_v7, %v71_v13  ;;  %v77_v15 = vadd.s32 1, %v71_v13  ;;  %v97_v38 = vcvt.s32.f32 %v89_v37 }
   0xa   :  { %v75_v18 = vsel %vm73_vm2, 1.0, %v178_v9 }
   0xb   :  { %vm74_vm3 = vcmp.eq.s32.totalorder %v18_v7, %v72_v14  ;;  %v78_v16 = vadd.s32 1, %v72_v14  ;;  %vm79_vm4 = vcmp.eq.s32.totalorder %v18_v7, %v77_v15 }
   0xc   :  { %v76_v17 = vsel %vm74_vm3, 1.0, %v178_v9  ;;  %v81_v19 = vsel %vm79_vm4, 1.0, %v178_v9 }
   0xd   :  { %vm80_vm5 = vcmp.eq.s32.totalorder %v18_v7, %v78_v16  ;;  %v83_v22 = vsub.f32 %v75_v18, %v81_v19 }
   0xe   :  { %v82_v20 = vsel %vm80_vm5, 1.0, %v178_v9 }
   0xf   :  { %v84_v21 = vsub.f32 %v76_v17, %v82_v20 }
  0x11   :  { %116 = vmatpush.msra.mxu1 %v84_v21 }
  0x13   :  { %117 = vmatpush.msra.mxu1 %v83_v22 }
  0x75   :  { %v21_v8 = vpop.permute.xlu0 %20 }
  0x76   :  { %vm22_vm1 = vcmp.eq.s32.totalorder %v21_v8, %v18_v7 }
  0x77   :  { %v139_v10 = vsel %vm22_vm1, 1.0, %v178_v9 }
  0x78   :  { %140 = vmatmul.msk.f32.vlgmr.msra.gmra.mxu0 %vm25_vm0, %v139_v10 }
  0xf5   :  { %v46_v23 = vpop.f32.mrf.mxu0 }
  0xf6   :  { %v141_v24 = vmul.f32 -1.442695, %v46_v23 }
  0xf8   :  { %147 = vpow2.f32 %v141_v24 }
  0xfe   :  { %v148_v25 = vpop.eup %147 }
  0xff   :  { %v52_v26 = vadd.f32 1.0, %v148_v25 }
 0x101   :  { %149 = vrcp.f32 %v52_v26  ;;  %v64_v30 = vand.u32 2147483648, %v52_v26  ;;  %v62_v32 = vand.u32 2147483647, %v52_v26  ;;  %vm58_vm7 = vweird.f32 %v52_v26 }
 0x103   :  { %v65_v34 = vor.u32 1.1754944e-38, %v64_v30  ;;  %vm63_vm10 = vcmp.eq.f32.partialorder %v62_v32, 8.507059e+37 }
 0x107   :  { %v150_v27 = vpop.eup %149 }
 0x108   :  { %v54_v28 = vmul.f32 %v150_v27, %v52_v26  ;;  %vm59_vm6 = vweird.f32 %v150_v27 }
 0x109   :  { %vm60_vm8 = vmor %vm58_vm7, %vm59_vm6 }
 0x10a   :  { %v55_v29 = vsub.f32 1.0, %v54_v28 }
 0x10c   :  { %v56_v31 = vmul.f32 %v150_v27, %v55_v29 }
 0x10e   :  { %v57_v33 = vadd.f32 %v150_v27, %v56_v31 }
 0x110   :  { %v61_v35 = vsel %vm60_vm8, %v150_v27, %v57_v33 }
 0x111   :  { %v66_v36 = vsel %vm63_vm10, %v65_v34, %v61_v35 }
 0x112   :  { %142 = vmatmul.msk.f32.vlgmr.msra.gmra.mxu1 %vm98_vm9, %v66_v36 }
 0x18f   :  { %v119_v39 = vpop.f32.mrf.mxu1 }
 0x190   :  { %v120_v40 = vadd.f32 %v119_v39, %v97_v38 }
 0x192   :  { %122 = vst.msk [vmem:[#allocation2] sm:$0xff] %vm25_vm0, %v120_v40 }
 0x193   :  { %133 = dma.vmem_to_hbm [thread:$0]  %s129_s18, 128, %s131_s21, [#allocation3]  }
 0x194   :  { %175 = dma.done.wait [#allocation3], 128  }
 0x195   :  { %176 = vsyncadd [#allocation3], 4294967168 }
 0x196   :  { %138 = vsyncpa [#allocation3], 1 }

</bundles_post_ra>
